<compile_context>
chip_gen: v7x
topology: tpu7x:2x2x1
jax: 0.10.0
libtpu: 0.0.40
codegen_flags: <defaults>
</compile_context>

<pallas_src>
import functools

import jax
import jax.numpy as jnp
from jax import lax
from jax.experimental import pallas as pl
from jax.experimental.pallas import tpu as pltpu

LANE = 128


def _round_up(x, m):
    return ((x + m - 1) // m) * m


# ----------------------------- Pallas kernel -------------------------------
def tesnet_head_kernel(x_ref, w1t_ref, b1_ref, w2t_ref, b2_ref, pnormt_ref,
                       wlastt_ref, proj_ref, minc_ref, logits_ref, *, B, HW):
    """One grid step processes B images folded into a (B*HW, Cin) block."""
    x = x_ref[...]                        # (B*HW, Cin)

    # add_on_layers: 1x1 Conv -> ReLU -> 1x1 Conv -> Sigmoid (per-pixel matmuls)
    z1 = jnp.dot(x, w1t_ref[...], preferred_element_type=jnp.float32) + b1_ref[...]
    z1 = jnp.maximum(z1, 0.0)
    z2 = jnp.dot(z1, w2t_ref[...], preferred_element_type=jnp.float32) + b2_ref[...]
    z = jax.nn.sigmoid(z2)                # (B*HW, D) == conv_features fed to head

    # _project2basis: single matmul against pre-normalized, lane-padded prototypes
    proj = jnp.dot(z, pnormt_ref[...], preferred_element_type=jnp.float32)  # (B*HW, Ppad)
    proj_ref[...] = proj                  # lane-dense store (Ppad is a multiple of 128)

    # _cosine_convolution fused: cos = -(z/||z||) @ pnorm.T == -proj / max(||z||, 1e-12)
    inv_norm = pl.reciprocal(
        jnp.maximum(jnp.sqrt(jnp.sum(z * z, axis=1, keepdims=True)), 1e-12),
        approx=False)                     # exact reciprocal -> parity with torch math
    cos = -proj * inv_norm                # (B*HW, Ppad)

    # per-image global min (cosine) / max (projection) pooling over spatial dim
    ppad = proj.shape[-1]
    minc_ref[0] = jnp.min(cos.reshape(B, HW, ppad), axis=1)     # (B, Ppad)
    maxp = jnp.max(proj.reshape(B, HW, ppad), axis=1)           # (B, Ppad)

    # last_layer (no bias), batched over the B images of this block
    logits_ref[0] = jnp.dot(maxp, wlastt_ref[...],
                            preferred_element_type=jnp.float32)  # (B, Cpad)


def tesnet_head_pallas(feat_flat, w1, b1, w2, b2, protos, wlast):
    """feat_flat: (N, HW, Cin) f32. Returns (proj (N,HW,P), min_cos (N,P), logits (N,C))."""
    N, HW, Cin = feat_flat.shape
    D = w1.shape[0]
    P = protos.shape[0]
    C = wlast.shape[0]
    Ppad = _round_up(P, LANE)
    Cpad = _round_up(C, LANE)

    # Grid-invariant prep hoisted out of the kernel:
    #   prototype L2-normalization (F.normalize, eps=1e-12), weight transposes
    #   (so the kernel never transposes in VMEM), and zero lane-padding of P/C.
    pnorm = protos / jnp.maximum(
        jnp.sqrt(jnp.sum(protos * protos, axis=1, keepdims=True)), 1e-12)
    pnorm_t = jnp.zeros((D, Ppad), jnp.float32).at[:, :P].set(pnorm.T)
    wlast_t = jnp.zeros((Ppad, Cpad), jnp.float32).at[:P, :C].set(wlast.T)
    w1_t = jnp.asarray(w1.T, jnp.float32)   # (Cin, D)
    w2_t = jnp.asarray(w2.T, jnp.float32)   # (D, D)

    # Batch-fold: each grid step handles B images; use a 2-way parallel axis
    # when N is even so both TensorCores get work on v7x.
    G = 2 if (N % 2 == 0 and N >= 2) else 1
    B = N // G
    x2d = feat_flat.reshape(N * HW, Cin)

    out_shapes = (
        jax.ShapeDtypeStruct((N * HW, Ppad), jnp.float32),   # project distances (flat)
        jax.ShapeDtypeStruct((G, B, Ppad), jnp.float32),     # cosine min distances
        jax.ShapeDtypeStruct((G, B, Cpad), jnp.float32),     # logits
    )
    in_specs = [
        pl.BlockSpec((B * HW, Cin), lambda g: (g, 0)),
        pl.BlockSpec((Cin, D), lambda g: (0, 0)),
        pl.BlockSpec((1, D), lambda g: (0, 0)),
        pl.BlockSpec((D, D), lambda g: (0, 0)),
        pl.BlockSpec((1, D), lambda g: (0, 0)),
        pl.BlockSpec((D, Ppad), lambda g: (0, 0)),
        pl.BlockSpec((Ppad, Cpad), lambda g: (0, 0)),
    ]
    out_specs = (
        pl.BlockSpec((B * HW, Ppad), lambda g: (g, 0)),
        pl.BlockSpec((1, B, Ppad), lambda g: (g, 0, 0)),
        pl.BlockSpec((1, B, Cpad), lambda g: (g, 0, 0)),
    )
    proj_pad, minc_pad, logits_pad = pl.pallas_call(
        functools.partial(tesnet_head_kernel, B=B, HW=HW),
        out_shape=out_shapes,
        grid=(G,),
        in_specs=in_specs,
        out_specs=out_specs,
        compiler_params=pltpu.CompilerParams(dimension_semantics=("parallel",)),
    )(x2d, w1_t, b1, w2_t, b2, pnorm_t, wlast_t)

    proj = proj_pad.reshape(N, HW, Ppad)[:, :, :P]
    min_cos = minc_pad.reshape(N, Ppad)[:, :P]
    logits = logits_pad.reshape(N, Cpad)[:, :C]
    return proj, min_cos, logits


# ------------------------------ full forward -------------------------------
def tesnet_forward(x_nchw, params):
    """x_nchw: (N, 3, H, W).  Returns (logits, min_distances, proto_class_id, distances)."""
    # Synthetic backbone stand-in (plain JAX glue): 3x3 conv stride 2 + ReLU.
    feat = lax.conv_general_dilated(
        x_nchw, params["feat_w"], window_strides=(2, 2), padding=((1, 1), (1, 1)),
        dimension_numbers=("NCHW", "OIHW", "NCHW"))
    feat = jnp.maximum(feat + params["feat_b"][None, :, None, None], 0.0)
    N, Cf, Hf, Wf = feat.shape

    # NCHW -> (N, HW, C) for the Pallas kernel.
    feat_flat = jnp.transpose(feat, (0, 2, 3, 1)).reshape(N, Hf * Wf, Cf)

    proj, min_cos, logits = tesnet_head_pallas(
        feat_flat, params["addon_w1"], params["addon_b1"],
        params["addon_w2"], params["addon_b2"],
        params["prototype_vectors"], params["last_layer_w"])

    P = params["prototype_vectors"].shape[0]
    # (N, HW, P) -> (N, P, Hf, Wf) to match PyTorch conv output layout.
    distances = jnp.transpose(proj.reshape(N, Hf, Wf, P), (0, 3, 1, 2))
    return logits, min_cos, params["prototype_class_identity"], distances


# -------------------------- pure-JAX reference -----------------------------
def tesnet_head_ref(feat_flat, w1, b1, w2, b2, protos, wlast):
    z1 = jnp.maximum(jnp.einsum("nsc,dc->nsd", feat_flat, w1) + b1[None], 0.0)
    z = jax.nn.sigmoid(jnp.einsum("nsd,ed->nse", z1, w2) + b2[None])
    pnorm = protos / jnp.maximum(
        jnp.sqrt(jnp.sum(protos * protos, axis=1, keepdims=True)), 1e-12)
    proj = jnp.einsum("nsd,pd->nsp", z, pnorm)
    znorm = z / jnp.maximum(
        jnp.sqrt(jnp.sum(z * z, axis=2, keepdims=True)), 1e-12)
    cos = -jnp.einsum("nsd,pd->nsp", znorm, pnorm)
    min_cos = jnp.min(cos, axis=1)
    maxp = jnp.max(proj, axis=1)
    logits = maxp @ wlast.T
    return proj, min_cos, logits


# ------------------------------ parameter init ------------------------------
def init_params(key, *, in_ch=3, feat_ch=8, proto_dim=8, num_prototypes=40,
                num_classes=10, incorrect_weight=-0.5):
    # feat_ch == proto_dim so the 'bottleneck' add-on loop runs exactly once
    # (Conv 1x1 -> ReLU -> Conv 1x1 -> Sigmoid), matching the module's logic.
    k = jax.random.split(key, 5)
    params = {}
    # backbone stand-in
    params["feat_w"] = (jax.random.normal(k[0], (feat_ch, in_ch, 3, 3), jnp.float32)
                        * (2.0 / (in_ch * 9)) ** 0.5)
    params["feat_b"] = jnp.zeros((feat_ch,), jnp.float32)
    # add-on layers (kaiming-normal-ish, zero bias as in _initialize_weights)
    params["addon_w1"] = (jax.random.normal(k[1], (proto_dim, feat_ch), jnp.float32)
                          * (2.0 / feat_ch) ** 0.5)
    params["addon_b1"] = jnp.zeros((1, proto_dim), jnp.float32)
    params["addon_w2"] = (jax.random.normal(k[2], (proto_dim, proto_dim), jnp.float32)
                          * (2.0 / proto_dim) ** 0.5)
    params["addon_b2"] = jnp.zeros((1, proto_dim), jnp.float32)
    # prototype_vectors = torch.rand(prototype_shape) with shape (P, D, 1, 1)
    params["prototype_vectors"] = jax.random.uniform(
        k[3], (num_prototypes, proto_dim), jnp.float32)
    # prototype_class_identity and last_layer weights (set_last_layer_incorrect_connection)
    ppc = num_prototypes // num_classes
    proto_ids = jnp.arange(num_prototypes) // ppc
    identity = jnp.asarray(
        proto_ids[:, None] == jnp.arange(num_classes)[None, :], jnp.float32)  # (P, C)
    pos = identity.T                                                          # (C, P)
    params["prototype_class_identity"] = identity
    params["last_layer_w"] = 1.0 * pos + incorrect_weight * (1.0 - pos)
    return params


if __name__ == "__main__":
    key = jax.random.PRNGKey(0)
    pkey, xkey = jax.random.split(key)
    params = init_params(pkey, in_ch=3, feat_ch=8, proto_dim=8,
                         num_prototypes=40, num_classes=10)

    x = jax.random.normal(xkey, (2, 3, 16, 16), jnp.float32)   # NCHW like PyTorch

    logits, min_distances, proto_class_id, distances = jax.jit(
        functools.partial(tesnet_forward, params=params))(x)
    jax.block_until_ready((logits, min_distances, proto_class_id, distances))

    assert logits.shape == (2, 10)
    assert min_distances.shape == (2, 40)
    assert proto_class_id.shape == (40, 10)
    assert distances.shape == (2, 40, 8, 8)

    # Correctness check against a pure-JAX reference of the head.
    feat = lax.conv_general_dilated(
        x, params["feat_w"], window_strides=(2, 2), padding=((1, 1), (1, 1)),
        dimension_numbers=("NCHW", "OIHW", "NCHW"))
    feat = jnp.maximum(feat + params["feat_b"][None, :, None, None], 0.0)
    N, Cf, Hf, Wf = feat.shape
    feat_flat = jnp.transpose(feat, (0, 2, 3, 1)).reshape(N, Hf * Wf, Cf)
    proj_r, minc_r, logits_r = tesnet_head_ref(
        feat_flat, params["addon_w1"], params["addon_b1"][0],
        params["addon_w2"], params["addon_b2"][0],
        params["prototype_vectors"], params["last_layer_w"])
    dist_r = jnp.transpose(proj_r.reshape(N, Hf, Wf, -1), (0, 3, 1, 2))
    assert jnp.allclose(distances, dist_r, atol=1e-4, rtol=1e-4)
    assert jnp.allclose(min_distances, minc_r, atol=1e-4, rtol=1e-4)
    assert jnp.allclose(logits, logits_r, atol=1e-4, rtol=1e-4)

    print("KERNEL_OK")
</pallas_src>

<mosaic_0001>
module attributes {stable_mosaic.version = 11 : i64} {
  func.func @tesnet_head_kernel(%arg0: i32, %arg1: memref<64x8xf32, #tpu.memory_space<vmem>>, %arg2: memref<8x8xf32, #tpu.memory_space<vmem>>, %arg3: memref<1x8xf32, #tpu.memory_space<vmem>>, %arg4: memref<8x8xf32, #tpu.memory_space<vmem>>, %arg5: memref<1x8xf32, #tpu.memory_space<vmem>>, %arg6: memref<8x128xf32, #tpu.memory_space<vmem>>, %arg7: memref<128x128xf32, #tpu.memory_space<vmem>>, %arg8: memref<64x128xf32, #tpu.memory_space<vmem>>, %arg9: memref<1x1x128xf32, #tpu.memory_space<vmem>>, %arg10: memref<1x1x128xf32, #tpu.memory_space<vmem>>) attributes {dimension_semantics = [#tpu.dimension_semantics<parallel>], iteration_bounds = array<i64: 2>, scalar_prefetch = 0 : i64, scratch_operands = 0 : i64, tpu.core_type = #tpu.core_type<tc>, window_params = [{transform_indices = @transform_0, window_bounds = array<i64: 64, 8>}, {pipeline_mode = #tpu.pipeline_mode<synchronous>, transform_indices = @transform_1, window_bounds = array<i64: 8, 8>}, {pipeline_mode = #tpu.pipeline_mode<synchronous>, transform_indices = @transform_2, window_bounds = array<i64: 1, 8>}, {pipeline_mode = #tpu.pipeline_mode<synchronous>, transform_indices = @transform_3, window_bounds = array<i64: 8, 8>}, {pipeline_mode = #tpu.pipeline_mode<synchronous>, transform_indices = @transform_4, window_bounds = array<i64: 1, 8>}, {pipeline_mode = #tpu.pipeline_mode<synchronous>, transform_indices = @transform_5, window_bounds = array<i64: 8, 128>}, {pipeline_mode = #tpu.pipeline_mode<synchronous>, transform_indices = @transform_6, window_bounds = array<i64: 128, 128>}, {transform_indices = @transform_7, window_bounds = array<i64: 64, 128>}, {transform_indices = @transform_8, window_bounds = array<i64: 1, 1, 128>}, {transform_indices = @transform_9, window_bounds = array<i64: 1, 1, 128>}]} {
    %c0 = arith.constant 0 : index
    %c0_0 = arith.constant 0 : index
    %0 = vector.load %arg1[%c0, %c0_0] : memref<64x8xf32, #tpu.memory_space<vmem>>, vector<64x8xf32>
    %c0_1 = arith.constant 0 : index
    %c0_2 = arith.constant 0 : index
    %1 = vector.load %arg2[%c0_1, %c0_2] : memref<8x8xf32, #tpu.memory_space<vmem>>, vector<8x8xf32>
    %cst = arith.constant dense<0.000000e+00> : vector<64x8xf32>
    %2 = tpu.matmul %0, %1, %cst {dimension_numbers = #tpu.dot_dimension_numbers<[1], [0], [0], [1], [0, 0, 1, 1], [], []>} : vector<64x8xf32>, vector<8x8xf32>, vector<64x8xf32> -> vector<64x8xf32>
    %c0_3 = arith.constant 0 : index
    %c0_4 = arith.constant 0 : index
    %3 = vector.load %arg3[%c0_3, %c0_4] : memref<1x8xf32, #tpu.memory_space<vmem>>, vector<1x8xf32>
    %4 = vector.broadcast %3 : vector<1x8xf32> to vector<64x8xf32>
    %5 = arith.addf %2, %4 : vector<64x8xf32>
    %cst_5 = arith.constant 0.000000e+00 : f32
    %6 = vector.broadcast %cst_5 : f32 to vector<64x8xf32>
    %7 = arith.maximumf %5, %6 : vector<64x8xf32>
    %c0_6 = arith.constant 0 : index
    %c0_7 = arith.constant 0 : index
    %8 = vector.load %arg4[%c0_6, %c0_7] : memref<8x8xf32, #tpu.memory_space<vmem>>, vector<8x8xf32>
    %cst_8 = arith.constant dense<0.000000e+00> : vector<64x8xf32>
    %9 = tpu.matmul %7, %8, %cst_8 {dimension_numbers = #tpu.dot_dimension_numbers<[1], [0], [0], [1], [0, 0, 1, 1], [], []>} : vector<64x8xf32>, vector<8x8xf32>, vector<64x8xf32> -> vector<64x8xf32>
    %c0_9 = arith.constant 0 : index
    %c0_10 = arith.constant 0 : index
    %10 = vector.load %arg5[%c0_9, %c0_10] : memref<1x8xf32, #tpu.memory_space<vmem>>, vector<1x8xf32>
    %11 = vector.broadcast %10 : vector<1x8xf32> to vector<64x8xf32>
    %12 = arith.addf %9, %11 : vector<64x8xf32>
    %13 = arith.negf %12 : vector<64x8xf32>
    %14 = math.exp %13 : vector<64x8xf32>
    %cst_11 = arith.constant 1.000000e+00 : f32
    %15 = vector.broadcast %cst_11 : f32 to vector<64x8xf32>
    %16 = arith.addf %15, %14 : vector<64x8xf32>
    %17 = arith.divf %15, %16 : vector<64x8xf32>
    %c0_12 = arith.constant 0 : index
    %c0_13 = arith.constant 0 : index
    %18 = vector.load %arg6[%c0_12, %c0_13] : memref<8x128xf32, #tpu.memory_space<vmem>>, vector<8x128xf32>
    %cst_14 = arith.constant dense<0.000000e+00> : vector<64x128xf32>
    %19 = tpu.matmul %17, %18, %cst_14 {dimension_numbers = #tpu.dot_dimension_numbers<[1], [0], [0], [1], [0, 0, 1, 1], [], []>} : vector<64x8xf32>, vector<8x128xf32>, vector<64x128xf32> -> vector<64x128xf32>
    %c0_15 = arith.constant 0 : index
    %c0_16 = arith.constant 0 : index
    %20 = vector.load %arg8[%c0_15, %c0_16] : memref<64x128xf32, #tpu.memory_space<vmem>>, vector<64x128xf32>
    tpu.vector_store %arg8[%c0_15, %c0_16], %19 {strides = array<i32>} : memref<64x128xf32, #tpu.memory_space<vmem>>, vector<64x128xf32>,
    %21 = arith.mulf %17, %17 : vector<64x8xf32>
    %cst_17 = arith.constant dense<0.000000e+00> : vector<64xf32>
    %22 = vector.multi_reduction <add>, %21, %cst_17 [1] : vector<64x8xf32> to vector<64xf32>
    %23 = vector.shape_cast %22 : vector<64xf32> to vector<64x1xf32>
    %24 = math.sqrt %23 : vector<64x1xf32>
    %cst_18 = arith.constant 9.99999996E-13 : f32
    %25 = vector.broadcast %cst_18 : f32 to vector<64x1xf32>
    %26 = arith.maximumf %24, %25 : vector<64x1xf32>
    %27 = tpu.reciprocal %26 : vector<64x1xf32> -> vector<64x1xf32>
    %cst_19 = arith.constant 0.000000e+00 : f32
    %28 = vector.broadcast %cst_19 : f32 to vector<64x128xf32>
    %29 = arith.subf %28, %19 : vector<64x128xf32>
    %30 = vector.broadcast %27 : vector<64x1xf32> to vector<64x128xf32>
    %31 = arith.mulf %29, %30 : vector<64x128xf32>
    %32 = vector.shape_cast %31 : vector<64x128xf32> to vector<1x64x128xf32>
    %cst_20 = arith.constant dense<0x7F800000> : vector<1x128xf32>
    %33 = vector.multi_reduction <minimumf>, %32, %cst_20 [1] : vector<1x64x128xf32> to vector<1x128xf32>
    %c0_21 = arith.constant 0 : index
    %c0_22 = arith.constant 0 : index
    %c0_23 = arith.constant 0 : index
    %34 = vector.load %arg9[%c0_21, %c0_22, %c0_23] : memref<1x1x128xf32, #tpu.memory_space<vmem>>, vector<1x1x128xf32>
    %35 = vector.shape_cast %34 : vector<1x1x128xf32> to vector<1x128xf32>
    %36 = vector.shape_cast %33 : vector<1x128xf32> to vector<1x1x128xf32>
    tpu.vector_store %arg9[%c0_21, %c0_22, %c0_23], %36 {strides = array<i32>} : memref<1x1x128xf32, #tpu.memory_space<vmem>>, vector<1x1x128xf32>,
    %37 = vector.shape_cast %19 : vector<64x128xf32> to vector<1x64x128xf32>
    %cst_24 = arith.constant dense<0xFF800000> : vector<1x128xf32>
    %38 = vector.multi_reduction <maximumf>, %37, %cst_24 [1] : vector<1x64x128xf32> to vector<1x128xf32>
    %c0_25 = arith.constant 0 : index
    %c0_26 = arith.constant 0 : index
    %39 = vector.load %arg7[%c0_25, %c0_26] : memref<128x128xf32, #tpu.memory_space<vmem>>, vector<128x128xf32>
    %cst_27 = arith.constant dense<0.000000e+00> : vector<1x128xf32>
    %40 = tpu.matmul %38, %39, %cst_27 {dimension_numbers = #tpu.dot_dimension_numbers<[1], [0], [0], [1], [0, 0, 1, 1], [], []>} : vector<1x128xf32>, vector<128x128xf32>, vector<1x128xf32> -> vector<1x128xf32>
    %c0_28 = arith.constant 0 : index
    %c0_29 = arith.constant 0 : index
    %c0_30 = arith.constant 0 : index
    %41 = vector.load %arg10[%c0_28, %c0_29, %c0_30] : memref<1x1x128xf32, #tpu.memory_space<vmem>>, vector<1x1x128xf32>
    %42 = vector.shape_cast %41 : vector<1x1x128xf32> to vector<1x128xf32>
    %43 = vector.shape_cast %40 : vector<1x128xf32> to vector<1x1x128xf32>
    tpu.vector_store %arg10[%c0_28, %c0_29, %c0_30], %43 {strides = array<i32>} : memref<1x1x128xf32, #tpu.memory_space<vmem>>, vector<1x1x128xf32>,
    return
  }
  func.func @transform_0(%arg0: i32) -> (i32, i32) {
    %c0_i32 = arith.constant 0 : i32
    %c0_i32_0 = arith.constant 0 : i32
    return %arg0, %c0_i32 : i32, i32
  }
  func.func @transform_1(%arg0: i32) -> (i32, i32) {
    %c0_i32 = arith.constant 0 : i32
    %c0_i32_0 = arith.constant 0 : i32
    %c0_i32_1 = arith.constant 0 : i32
    return %c0_i32, %c0_i32_0 : i32, i32
  }
  func.func @transform_2(%arg0: i32) -> (i32, i32) {
    %c0_i32 = arith.constant 0 : i32
    %c0_i32_0 = arith.constant 0 : i32
    %c0_i32_1 = arith.constant 0 : i32
    return %c0_i32, %c0_i32_0 : i32, i32
  }
  func.func @transform_3(%arg0: i32) -> (i32, i32) {
    %c0_i32 = arith.constant 0 : i32
    %c0_i32_0 = arith.constant 0 : i32
    %c0_i32_1 = arith.constant 0 : i32
    return %c0_i32, %c0_i32_0 : i32, i32
  }
  func.func @transform_4(%arg0: i32) -> (i32, i32) {
    %c0_i32 = arith.constant 0 : i32
    %c0_i32_0 = arith.constant 0 : i32
    %c0_i32_1 = arith.constant 0 : i32
    return %c0_i32, %c0_i32_0 : i32, i32
  }
  func.func @transform_5(%arg0: i32) -> (i32, i32) {
    %c0_i32 = arith.constant 0 : i32
    %c0_i32_0 = arith.constant 0 : i32
    %c0_i32_1 = arith.constant 0 : i32
    return %c0_i32, %c0_i32_0 : i32, i32
  }
  func.func @transform_6(%arg0: i32) -> (i32, i32) {
    %c0_i32 = arith.constant 0 : i32
    %c0_i32_0 = arith.constant 0 : i32
    %c0_i32_1 = arith.constant 0 : i32
    return %c0_i32, %c0_i32_0 : i32, i32
  }
  func.func @transform_7(%arg0: i32) -> (i32, i32) {
    %c0_i32 = arith.constant 0 : i32
    %c0_i32_0 = arith.constant 0 : i32
    return %arg0, %c0_i32 : i32, i32
  }
  func.func @transform_8(%arg0: i32) -> (i32, i32, i32) {
    %c0_i32 = arith.constant 0 : i32
    %c0_i32_0 = arith.constant 0 : i32
    %c0_i32_1 = arith.constant 0 : i32
    return %arg0, %c0_i32, %c0_i32_0 : i32, i32, i32
  }
  func.func @transform_9(%arg0: i32) -> (i32, i32, i32) {
    %c0_i32 = arith.constant 0 : i32
    %c0_i32_0 = arith.constant 0 : i32
    %c0_i32_1 = arith.constant 0 : i32
    return %arg0, %c0_i32, %c0_i32_0 : i32, i32, i32
  }
}

</mosaic_0001>

<bundles_post_ra>
// kernel: tesnet_forward.1
= control target key start
LH: loop header
LB: loop body
LE: loop exit
PB: predicated region body
PF: predicated region fallthrough
CT: control target
= control target key end

     0   :  { %15 = vsyncpa [#allocation3], 0  ;;  %s1949_s0 = inlined_call_operand.vmem [shape: f32[128,8], index: 0, kind: input, shape index: {}]   ;;  %s1950_s1 = inlined_call_operand.vmem [shape: f32[8,8], index: 1, kind: input, shape index: {}]   ;;  %s1951_s2 = inlined_call_operand.vmem [shape: f32[1,8], index: 2, kind: input, shape index: {}, may-alias: {2,4}]   ;;  %s1952_s3 = inlined_call_operand.vmem [shape: f32[8,8], index: 3, kind: input, shape index: {}]   ;;  %s1953_s4 = inlined_call_operand.vmem [shape: f32[1,8], index: 4, kind: input, shape index: {}, may-alias: {2,4}]   ;;  %s1954_s5 = inlined_call_operand.vmem [shape: f32[8,128], index: 5, kind: input, shape index: {}]   ;;  %s1955_s6 = inlined_call_operand.vmem [shape: f32[128,128], index: 6, kind: input, shape index: {}]   ;;  %s1956_s7 = inlined_call_operand.vmem [shape: f32[128,128], index: 7, kind: output, shape index: {0}]   ;;  %s1957_s8 = inlined_call_operand.hbm [shape: f32[2,1,128], index: 8, kind: output, shape index: {1}]   ;;  %s1958_s9 = inlined_call_operand.hbm [shape: f32[2,1,128], index: 9, kind: output, shape index: {2}]  }
   0x1   :  { %17 = vsyncpa [#allocation3 + $0x1], 0 }
   0x2   :  { %18 = vsyncpa [#allocation5], 0 }
   0x3   :  { %20 = vsyncpa [#allocation5 + $0x1], 0  ;;  %s1666_s30 = smov 0   ;;  %s1668_s10 = smov 0  }
   0x4   :  { %s1670_s11 = smov 0   ;;  %s1672_s12 = smov 0  }
   0x5 LB: > { %s1687_s13 = sadd.s32 4294967295, %s1609_s12   ;;  %s1213_s14 = sadd.s32 4294967294, %s1609_s12   ;;  %s1609_s12 = sphi %s1672_s12, %s1966_s12   ;;  %s1605_s11 = sphi %s1670_s11, %s1965_s11   ;;  %s1601_s10 = sphi %s1668_s10, %s1964_s10   ;;  %s1597_s30 = sphi %s1666_s30, %s1963_s30  }
   0x6   : > { %s1691_s15 = sadd.s32 1, %s1609_s12   ;;  %s211_s16 = sadd.s32 1, %s1605_s11 }
   0x7   : > { %s208_s17 = ssub.s32 %s1609_s12, %s1691_s15  ;;  %p221_p0 = scmp.ne.s32.totalorder %s1605_s11, %s1601_s10 }
   0x8   : > { %p209_p1 = scmp.eq.s32.totalorder %s208_s17, 0  ;;  %p222_p2 = scmp.eq.s32.totalorder %s1687_s13, 1 }
   0x9   : > { %p227_p3 = scmp.ne.s32.totalorder %s1601_s10, %s1597_s30  ;;  %p228_p4 = scmp.eq.s32.totalorder %s1213_s14, 1 }
   0xa   : > { %s1702_s18 = scalar_select %p209_p1, %s1605_s11, %s211_s16  }
   0xb   : > { %p1704_p5 = por %p222_p2, %p221_p0  ;;  %p1708_p6 = por %p228_p4, %p227_p3 }
   0xc   : > { %p1216_p7 = scmp.ge.s32.totalorder %s1609_s12, 1  ;;  %p299_p8 = scmp.lt.s32.totalorder %s1609_s12, 3 }
   0xe   : > { %p300_p9 = pnand %p1216_p7, %p299_p8 }
   0xf   : > { %v363_v0 = vld [vmem:[%s1950_s1] sm:$0xff] (!%p300_p9)  ;;  %s1217_s23 = sshll.u32 (!%p300_p9), %s1687_s13, 3  ;;  %vm371_vm0 = vcmask (!%p300_p9), 64512   ;;  %vm1612_vm1 = vmmov (!%p300_p9), 0   ;;  %s1959_s16 = sshll.u32 (!%p300_p9), %s1687_s13, 4 }
  0x10   : > { %303 = sbr.rel (%p300_p9) target bundleno = 959 (0x3bf), region = 48  ;;  %1303 = vmatprep.subr.mxu0 (!%p300_p9), %v363_v0  ;;  %p344_p10 = scmp.lt.s32.totalorder (!%p300_p9), %s1217_s23, 15  ;;  %v509_v9 = vld [vmem:[%s1952_s3] sm:$0xff] (!%p300_p9) }
  0x11   : > { %1304 = vmatpush3.msra.mxu0 (!%p300_p9), %v363_v0  ;;  %1317 = vmatprep.subr.mxu1 (!%p300_p9), %v509_v9  ;;  %v1221_v10 = vld [vmem:[%s1951_s2] ss:$0 sm:$0xff] (!%p300_p9)  ;;  %s1880_s22 = scalar_lea.hbm (!%p300_p9), %s1957_s8, %s1959_s16  ;;  %s1614_s28 = smov (!%p300_p9), [#allocation2]  }
  0x12   : > { %1318 = vmatpush3.msra.mxu1 (!%p300_p9), %v509_v9  ;;  %v694_v35 = vld [vmem:[%s1954_s5] sm:$0xff] (!%p300_p9)  ;;  %s1519_s29 = sshll.u32 (!%p300_p9), %s1614_s28, 4  ;;  %s1520_s29 = int_to_ptr.vmem [resolvable:$false] %s1519_s29 }
  0x13   : > { %1331 = vmatprep.subr.mxu0 (!%p300_p9), %v694_v35  ;;  %v1230_v36 = vld [vmem:[%s1953_s4] ss:$0 sm:$0xff] (!%p300_p9) }
  0x17   : > { %s1968_s23 = smov (!%p344_p10, %s1217_s23), 15 }
  0x18   : > { %s1218_s24 = sshll.u32 %s1968_s23, 3  ;;  %s1871_s23 = sand.u32 1, %s1601_s10  }
  0x19   : > { %s347_s27 = scalar_lea.vmem %s1949_s0, %s1218_s24  ;;  %s1857_s14 = scalar_lea.vmem %s1956_s7, %s1218_s24 }
  0x1a   : > { %v355_v1 = vld [vmem:[%s347_s27] sm:$0xff]  ;;  %v356_v2 = vld [vmem:[%s347_s27 + $0x8] sm:$0xff]  ;;  %v357_v3 = vld [vmem:[%s347_s27 + $0x10] sm:$0xff]  ;;  %s336_s24 = scalar_lea.vmem [#allocation2], %s1871_s23  ;;  %s1072_s26 = scalar_lea.sflag [#allocation3], %s1871_s23 }
  0x1b   : > { %1305 = vmatprep.mubr.msk.f32.mxu0 %vm371_vm0, %v355_v1  ;;  %v358_v4 = vld [vmem:[%s347_s27 + $0x18] sm:$0xff]  ;;  %v359_v5 = vld [vmem:[%s347_s27 + $0x20] sm:$0xff]  ;;  %v360_v6 = vld [vmem:[%s347_s27 + $0x28] sm:$0xff]  ;;  %s1092_s25 = sshll.u32 %s336_s24, 4  ;;  %s1093_s25 = int_to_ptr.vmem [resolvable:$true] %s1092_s25 }
  0x1c   : > { %1306 = vmatmul.mubr.msk.f32.vlgmr.msra.gmra.mrb[0].mxu0 %vm371_vm0, %v356_v2  ;;  %v361_v7 = vld [vmem:[%s347_s27 + $0x30] sm:$0xff]  ;;  %v362_v8 = vld [vmem:[%s347_s27 + $0x38] sm:$0xff]  ;;  %s1515_s27 = scalar_lea.vmem %s1093_s25, 16  ;;  %p1522_p0 = scmp.lt.s32.totalorder %s1093_s25, %s1520_s29 }
  0x1d   : > { %1308 = vmatprep.mubr.msk.f32.mxu0 %vm371_vm0, %v357_v3  ;;  %1332 = vmatpush3.msra.mxu0 %v694_v35  ;;  %p1516_p11 = scmp.ne.s32.totalorder %s1093_s25, %s1515_s27 }
  0x1f   : > { %p1517_p12 = pnand %p1516_p11, %p1704_p5 }
  0x20   : > { %1309 = vmatmul.mubr.msk.f32.gmra.mrb[2].mxu0 %vm371_vm0, %v358_v4 }
  0x21   : > { %1311 = vmatprep.mubr.msk.f32.mxu0 %vm371_vm0, %v359_v5  ;;  %p1518_p13 = pneg %p1517_p12 }
  0x24   : > { %1312 = vmatmul.mubr.msk.f32.gmra.mrb[4].mxu0 %vm371_vm0, %v360_v6 }
  0x25   : > { %1314 = vmatprep.mubr.msk.f32.mxu0 %vm371_vm0, %v361_v7 }
  0x28   : > { %1315 = vmatmul.mubr.msk.f32.gmra.mrb[6].mxu0 %vm371_vm0, %v362_v8 }
  0xef   : > { %v1307_v11 = vpop.f32.mrb[0].mxu0 }
  0xf0   : > { %v468_v12 = vadd.f32 %v1307_v11, %v1221_v10  ;;  %v462_v13 = vpop.f32.mrb[1].mxu0 }
  0xf1   : > { %v463_v14 = vadd.f32 %v1221_v10, %v462_v13 }
  0xf2   : > { %v502_v17 = vmax.f32 %v468_v12, 0.0 }
  0xf3   : > { %v501_v15 = vmax.f32 %v463_v14, 0.0  ;;  %v1310_v16 = vpop.f32.mrb[2].mxu0 }
  0xf4   : > { %v478_v18 = vadd.f32 %v1310_v16, %v1221_v10  ;;  %v472_v19 = vpop.f32.mrb[3].mxu0 }
  0xf5   : > { %v473_v20 = vadd.f32 %v1221_v10, %v472_v19  ;;  %1319 = vmatprep.mubr.msk.f32.mxu1 %vm371_vm0, %v501_v15 }
  0xf6   : > { %1320 = vmatmul.mubr.msk.f32.vlgmr.msra.gmra.mrb[0].mxu1 %vm371_vm0, %v502_v17  ;;  %v504_v23 = vmax.f32 %v478_v18, 0.0 }
  0xf7   : > { %v503_v21 = vmax.f32 %v473_v20, 0.0  ;;  %v1313_v22 = vpop.f32.mrb[4].mxu0 }
  0xf8   : > { %v488_v24 = vadd.f32 %v1313_v22, %v1221_v10  ;;  %v482_v25 = vpop.f32.mrb[5].mxu0 }
  0xf9   : > { %v483_v26 = vadd.f32 %v1221_v10, %v482_v25  ;;  %1322 = vmatprep.mubr.msk.f32.mxu1 %vm371_vm0, %v503_v21 }
  0xfa   : > { %1323 = vmatmul.mubr.msk.f32.gmra.mrb[2].mxu1 %vm371_vm0, %v504_v23  ;;  %v506_v29 = vmax.f32 %v488_v24, 0.0 }
  0xfb   : > { %v505_v27 = vmax.f32 %v483_v26, 0.0  ;;  %v1316_v28 = vpop.f32.mrb[6].mxu0 }
  0xfc   : > { %v498_v30 = vadd.f32 %v1316_v28, %v1221_v10  ;;  %v492_v31 = vpop.f32.mrb[7].mxu0 }
  0xfd   : > { %v493_v32 = vadd.f32 %v1221_v10, %v492_v31  ;;  %1325 = vmatprep.mubr.msk.f32.mxu1 %vm371_vm0, %v505_v27 }
  0xfe   : > { %1326 = vmatmul.mubr.msk.f32.gmra.mrb[4].mxu1 %vm371_vm0, %v506_v29  ;;  %v508_v34 = vmax.f32 %v498_v30, 0.0 }
  0xff   : > { %v507_v33 = vmax.f32 %v493_v32, 0.0 }
 0x101   : > { %1328 = vmatprep.mubr.msk.f32.mxu1 %vm371_vm0, %v507_v33 }
 0x102   : > { %1329 = vmatmul.mubr.msk.f32.gmra.mrb[6].mxu1 %vm371_vm0, %v508_v34 }
 0x1c9   : > { %v1321_v37 = vpop.f32.mrb[0].mxu1 }
 0x1ca   : > { %v613_v38 = vadd.f32 %v1321_v37, %v1230_v36  ;;  %v607_v39 = vpop.f32.mrb[1].mxu1  ;;  %v979_v37 = vld [vmem:[%s1955_s6] sm:$0xff] }
 0x1cb   : > { %v608_v40 = vadd.f32 %v1230_v36, %v607_v39 }
 0x1cc   : > { %v1240_v41 = vmul.f32 -1.442695, %v613_v38  ;;  %v980_v38 = vld [vmem:[%s1955_s6 + $0x8] sm:$0xff] }
 0x1cd   : > { %v1239_v42 = vmul.f32 -1.442695, %v608_v40  ;;  %v1324_v43 = vpop.f32.mrb[2].mxu1  ;;  %v1381_v39 = vpack.c.bf16 %v980_v38, %v979_v37  ;;  %v1611_v40 = vmov 0.0|0.0  }
 0x1ce   : > { %1451 = vpow2.f32 %v1240_v41  ;;  %v623_v44 = vadd.f32 %v1324_v43, %v1230_v36  ;;  %v617_v45 = vpop.f32.mrb[3].mxu1  ;;  %1380 = vmatprep.subr.bf16.mxu1 %v1611_v40  ;;  %v981_v41 = vld [vmem:[%s1955_s6 + $0x10] sm:$0xff] }
 0x1cf   : > { %1453 = vpow2.f32 %v1239_v42  ;;  %v618_v46 = vadd.f32 %v1230_v36, %v617_v45  ;;  %1382 = vmatpush3.bf16.msra.mxu1 %v1381_v39  ;;  %v982_v42 = vld [vmem:[%s1955_s6 + $0x18] sm:$0xff]  ;;  %v984_v45 = vld [vmem:[%s1955_s6 + $0x28] sm:$0xff] }
 0x1d0   : > { %v1242_v47 = vmul.f32 -1.442695, %v623_v44  ;;  %1383 = vmatprep.subr.bf16.mxu1 %v1611_v40  ;;  %v1384_v43 = vpack.c.bf16 %v982_v42, %v981_v41  ;;  %v983_v44 = vld [vmem:[%s1955_s6 + $0x20] sm:$0xff] }
 0x1d1   : > { %v1241_v48 = vmul.f32 -1.442695, %v618_v46  ;;  %v1327_v49 = vpop.f32.mrb[4].mxu1  ;;  %v1387_v46 = vpack.c.bf16 %v984_v45, %v983_v44 }
 0x1d2   : > { %1455 = vpow2.f32 %v1242_v47  ;;  %v633_v50 = vadd.f32 %v1327_v49, %v1230_v36  ;;  %v627_v51 = vpop.f32.mrb[5].mxu1  ;;  %v985_v47 = vld [vmem:[%s1955_s6 + $0x30] sm:$0xff] }
 0x1d3   : > { %1457 = vpow2.f32 %v1241_v48  ;;  %v628_v52 = vadd.f32 %v1230_v36, %v627_v51  ;;  %1385 = vmatpush3.bf16.msra.mxu1 %v1384_v43  ;;  %v986_v48 = vld [vmem:[%s1955_s6 + $0x38] sm:$0xff]  ;;  %v988_v51 = vld [vmem:[%s1955_s6 + $0x48] sm:$0xff] }
 0x1d4   : > { %v1244_v53 = vmul.f32 -1.442695, %v633_v50  ;;  %1386 = vmatprep.subr.bf16.mxu1 %v1611_v40  ;;  %v1390_v49 = vpack.c.bf16 %v986_v48, %v985_v47  ;;  %v987_v50 = vld [vmem:[%s1955_s6 + $0x40] sm:$0xff] }
 0x1d5   : > { %v1243_v54 = vmul.f32 -1.442695, %v628_v52  ;;  %v1330_v55 = vpop.f32.mrb[6].mxu1  ;;  %v1393_v52 = vpack.c.bf16 %v988_v51, %v987_v50 }
 0x1d6   : > { %1459 = vpow2.f32 %v1244_v53  ;;  %v643_v56 = vadd.f32 %v1330_v55, %v1230_v36  ;;  %v637_v57 = vpop.f32.mrb[7].mxu1  ;;  %v989_v53 = vld [vmem:[%s1955_s6 + $0x50] sm:$0xff] }
 0x1d7   : > { %1461 = vpow2.f32 %v1243_v54  ;;  %v638_v58 = vadd.f32 %v1230_v36, %v637_v57  ;;  %1388 = vmatpush3.bf16.msra.mxu1 %v1387_v46  ;;  %v990_v54 = vld [vmem:[%s1955_s6 + $0x58] sm:$0xff]  ;;  %v992_v57 = vld [vmem:[%s1955_s6 + $0x68] sm:$0xff] }
 0x1d8   : > { %v1452_v59 = vpop.eup %1451  ;;  %v1246_v60 = vmul.f32 -1.442695, %v643_v56  ;;  %1389 = vmatprep.subr.bf16.mxu1 %v1611_v40  ;;  %v1396_v55 = vpack.c.bf16 %v990_v54, %v989_v53  ;;  %v991_v56 = vld [vmem:[%s1955_s6 + $0x60] sm:$0xff] }
 0x1d9   : > { %v1454_v61 = vpop.eup %1453  ;;  %v671_v62 = vadd.f32 1.0, %v1452_v59  ;;  %v1245_v63 = vmul.f32 -1.442695, %v638_v58  ;;  %v1399_v58 = vpack.c.bf16 %v992_v57, %v991_v56  ;;  %v993_v59 = vld [vmem:[%s1955_s6 + $0x70] sm:$0xff] }
 0x1da   : > { %v670_v0 = vadd.f32 1.0, %v1454_v61  ;;  %1463 = vpow2.f32 %v1246_v60  ;;  %v994_v60 = vld [vmem:[%s1955_s6 + $0x78] sm:$0xff] }
 0x1db   : > { %1465 = vrcp.f32 %v671_v62  ;;  %1391 = vmatpush3.bf16.msra.mxu1 %v1390_v49  ;;  %v1402_v61 = vpack.c.bf16 %v994_v60, %v993_v59  ;;  %v1613_v62 = vmov 0.0  }
 0x1dc   : > { %v1456_v1 = vpop.eup %1455  ;;  %1467 = vrcp.f32 %v670_v0  ;;  %1392 = vmatprep.subr.bf16.mxu1 %v1611_v40  ;;  %1377 = vmatprep.mubr.msk.f32.mxu1 %vm1612_vm1, %v1613_v62 }
 0x1dd   : > { %v1458_v2 = vpop.eup %1457  ;;  %v673_v3 = vadd.f32 1.0, %v1456_v1  ;;  %1469 = vpow2.f32 %v1245_v63 }
 0x1de   : > { %v672_v4 = vadd.f32 1.0, %v1458_v2 }
 0x1df   : > { %1471 = vrcp.f32 %v673_v3  ;;  %1394 = vmatpush3.bf16.msra.mxu1 %v1393_v52 }
 0x1e0   : > { %v1460_v5 = vpop.eup %1459  ;;  %1473 = vrcp.f32 %v672_v4  ;;  %1395 = vmatprep.subr.bf16.mxu1 %v1611_v40 }
 0x1e1   : > { %v1462_v6 = vpop.eup %1461  ;;  %v675_v7 = vadd.f32 1.0, %v1460_v5 }
 0x1e2   : > { %v674_v8 = vadd.f32 1.0, %v1462_v6 }
 0x1e3   : > { %1475 = vrcp.f32 %v675_v7  ;;  %1397 = vmatpush3.bf16.msra.mxu1 %v1396_v55 }
 0x1e4   : > { %v1464_v9 = vpop.eup %1463  ;;  %1477 = vrcp.f32 %v674_v8  ;;  %1398 = vmatprep.subr.bf16.mxu1 %v1611_v40 }
 0x1e5   : > { %v1466_v10 = vpop.eup %1465  ;;  %v677_v11 = vadd.f32 1.0, %v1464_v9 }
 0x1e6   : > { %v1468_v12 = vpop.eup %1467  ;;  %v833_v13 = vmul.f32 %v1466_v10, %v1466_v10 }
 0x1e7   : > { %v1470_v14 = vpop.eup %1469  ;;  %1479 = vrcp.f32 %v677_v11  ;;  %1333 = vmatprep.mubr.msk.f32.mxu0 %vm371_vm0, %v1468_v12  ;;  %v832_v17 = vmul.f32 %v1468_v12, %v1468_v12  ;;  %1400 = vmatpush3.bf16.msra.mxu1 %v1399_v58 }
 0x1e8   : > { %v676_v15 = vadd.f32 1.0, %v1470_v14  ;;  %1334 = vmatmul.mubr.msk.f32.vlgmr.msra.gmra.mrb[8].mxu0 %vm371_vm0, %v1466_v10  ;;  %v843_v16 = vsel %vm371_vm0, %v833_v13, 0.0  ;;  %1401 = vmatprep.subr.bf16.mxu1 %v1611_v40 }
 0x1e9   : > { %v1472_v18 = vpop.eup %1471  ;;  %844 = vadd.xlane.f32.xlu0 %v843_v16  ;;  %v840_v22 = vsel %vm371_vm0, %v832_v17, 0.0 }
 0x1ea   : > { %v1474_v19 = vpop.eup %1473  ;;  %1481 = vrcp.f32 %v676_v15  ;;  %v835_v20 = vmul.f32 %v1472_v18, %v1472_v18 }
 0x1eb   : > { %1336 = vmatprep.mubr.msk.f32.mxu0 %vm371_vm0, %v1474_v19  ;;  %v834_v23 = vmul.f32 %v1474_v19, %v1474_v19  ;;  %1403 = vmatpush3.bf16.msra.mxu1 %v1402_v61 }
 0x1ec   : > { %1337 = vmatmul.mubr.msk.f32.gmra.mrb[10].mxu0 %vm371_vm0, %v1472_v18  ;;  %v849_v21 = vsel %vm371_vm0, %v835_v20, 0.0 }
 0x1ed   : > { %v1476_v24 = vpop.eup %1475  ;;  %850 = vadd.xlane.f32.xlu1 %v849_v21  ;;  %841 = vadd.xlane.f32.xlu0 %v840_v22  ;;  %v846_v27 = vsel %vm371_vm0, %v834_v23, 0.0 }
 0x1ee   : > { %v1478_v25 = vpop.eup %1477  ;;  %v837_v28 = vmul.f32 %v1476_v24, %v1476_v24 }
 0x1ef   : > { %1339 = vmatprep.mubr.msk.f32.mxu0 %vm371_vm0, %v1478_v25  ;;  %v836_v26 = vmul.f32 %v1478_v25, %v1478_v25 }
 0x1f0   : > { %1340 = vmatmul.mubr.msk.f32.gmra.mrb[12].mxu0 %vm371_vm0, %v1476_v24  ;;  %v855_v32 = vsel %vm371_vm0, %v837_v28, 0.0 }
 0x1f1   : > { %v1480_v29 = vpop.eup %1479  ;;  %847 = vadd.xlane.f32.xlu1 %v846_v27  ;;  %v852_v30 = vsel %vm371_vm0, %v836_v26, 0.0 }
 0x1f2   : > { %853 = vadd.xlane.f32.xlu0 %v852_v30  ;;  %v839_v33 = vmul.f32 %v1480_v29, %v1480_v29 }
 0x1f4   : > { %v1482_v31 = vpop.eup %1481  ;;  %v861_v36 = vsel %vm371_vm0, %v839_v33, 0.0 }
 0x1f5   : > { %1342 = vmatprep.mubr.msk.f32.mxu0 %vm371_vm0, %v1482_v31  ;;  %856 = vadd.xlane.f32.xlu1 %v855_v32  ;;  %v838_v34 = vmul.f32 %v1482_v31, %v1482_v31 }
 0x1f6   : > { %1343 = vmatmul.mubr.msk.f32.gmra.mrb[14].mxu0 %vm371_vm0, %v1480_v29 }
 0x1f7   : > { %v858_v35 = vsel %vm371_vm0, %v838_v34, 0.0 }
 0x1f8   : > { %859 = vadd.xlane.f32.xlu0 %v858_v35 }
 0x1f9   : > { %862 = vadd.xlane.f32.xlu1 %v861_v36 }
 0x276   : > { %v845_v0 = vpop.xlane.xlu0 %844 }
 0x277   : > { %1483 = vrsqrt.f32 %v845_v0  ;;  %vm873_vm2 = vcmp.eq.f32.partialorder %v845_v0, inf  ;;  %vm875_vm3 = vcmp.eq.f32.partialorder %v845_v0, 0.0  ;;  %v876_v18 = vand.u32 2147483648, %v845_v0 }
 0x27a   : > { %v1818_v63 = vpop.xlane.xlu1 %850  ;;  %v842_v2 = vpop.xlane.xlu0 %841 }
 0x27b   : > { %1485 = vrsqrt.f32 %v842_v2  ;;  %vm887_vm4 = vcmp.eq.f32.partialorder %v1818_v63, inf  ;;  %vm866_vm5 = vcmp.eq.f32.partialorder %v842_v2, inf  ;;  %vm889_vm6 = vcmp.eq.f32.partialorder %v1818_v63, 0.0 }
 0x27c   : > { %vm868_vm7 = vcmp.eq.f32.partialorder %v842_v2, 0.0  ;;  %v869_v23 = vand.u32 2147483648, %v842_v2  ;;  %v890_v32 = vand.u32 2147483648, %v1818_v63 }
 0x27e   : > { %v1820_v1 = vpop.xlane.xlu1 %847 }
 0x27f   : > { %v854_v4 = vpop.xlane.xlu0 %853  ;;  %vm880_vm12 = vcmp.eq.f32.partialorder %v1820_v1, inf  ;;  %vm882_vm13 = vcmp.eq.f32.partialorder %v1820_v1, 0.0  ;;  %v883_v40 = vand.u32 2147483648, %v1820_v1 }
 0x280   : > { %vm894_vm9 = vcmp.eq.f32.partialorder %v854_v4, inf  ;;  %v897_v30 = vand.u32 2147483648, %v854_v4  ;;  %vm896_vm11 = vcmp.eq.f32.partialorder %v854_v4, 0.0 }
 0x281   : > { %v1484_v7 = vpop.eup %1483 }
 0x282   : > { %v857_v3 = vpop.xlane.xlu1 %856  ;;  %v872_v11 = vmul.f32 %v1484_v7, %v845_v0 }
 0x283   : > { %1487 = vrsqrt.f32 %v857_v3  ;;  %vm901_vm8 = vcmp.eq.f32.partialorder %v857_v3, inf  ;;  %v904_v28 = vand.u32 2147483648, %v857_v3  ;;  %vm903_vm10 = vcmp.eq.f32.partialorder %v857_v3, 0.0 }
 0x284   : > { %1489 = vrsqrt.f32 %v854_v4  ;;  %v874_v17 = vsel %vm873_vm2, %v845_v0, %v872_v11 }
 0x285   : > { %1491 = vrsqrt.f32 %v1818_v63  ;;  %v1825_v6 = vpop.xlane.xlu0 %859  ;;  %v1486_v8 = vpop.eup %1485  ;;  %v877_v25 = vsel %vm875_vm3, %v876_v18, %v874_v17 }
 0x286   : > { %v1822_v5 = vpop.xlane.xlu1 %862  ;;  %1493 = vrsqrt.f32 %v1820_v1  ;;  %v865_v12 = vmul.f32 %v1486_v8, %v842_v2  ;;  %v921_v35 = vmax.f32 %v877_v25, 1e-12  ;;  %vm908_vm15 = vcmp.eq.f32.partialorder %v1825_v6, inf }
 0x287   : > { %1495 = vrsqrt.f32 %v1822_v5  ;;  %vm915_vm14 = vcmp.eq.f32.partialorder %v1822_v5, inf  ;;  %v918_v46 = vand.u32 2147483648, %v1822_v5  ;;  %v911_v48 = vand.u32 2147483648, %v1825_v6 }
 0x288   : > { %1497 = vrsqrt.f32 %v1825_v6  ;;  %v867_v20 = vsel %vm866_vm5, %v842_v2, %v865_v12  ;;  %vm917_vm0 = vcmp.eq.f32.partialorder %v1822_v5, 0.0  ;;  %vm910_vm1 = vcmp.eq.f32.partialorder %v1825_v6, 0.0 }
 0x289   : > { %v870_v29 = vsel %vm868_vm7, %v869_v23, %v867_v20  ;;  %1499 = vrcp.f32 %v921_v35 }
 0x28a   : > { %v920_v38 = vmax.f32 %v870_v29, 1e-12 }
 0x28c   : > { %1501 = vrcp.f32 %v920_v38 }
 0x28d   : > { %v1488_v9 = vpop.eup %1487 }
 0x28e   : > { %v1490_v10 = vpop.eup %1489  ;;  %v900_v13 = vmul.f32 %v1488_v9, %v857_v3 }
 0x28f   : > { %v1492_v14 = vpop.eup %1491  ;;  %v893_v15 = vmul.f32 %v1490_v10, %v854_v4 }
 0x290   : > { %v1494_v16 = vpop.eup %1493  ;;  %v886_v22 = vmul.f32 %v1492_v14, %v1818_v63  ;;  %v902_v24 = vsel %vm901_vm8, %v857_v3, %v900_v13 }
 0x291   : > { %v1496_v19 = vpop.eup %1495  ;;  %v879_v26 = vmul.f32 %v1494_v16, %v1820_v1  ;;  %v895_v27 = vsel %vm894_vm9, %v854_v4, %v893_v15  ;;  %v905_v33 = vsel %vm903_vm10, %v904_v28, %v902_v24 }
 0x292   : > { %v1498_v21 = vpop.eup %1497  ;;  %v914_v31 = vmul.f32 %v1496_v19, %v1822_v5  ;;  %v888_v36 = vsel %vm887_vm4, %v1818_v63, %v886_v22  ;;  %v898_v37 = vsel %vm896_vm11, %v897_v30, %v895_v27  ;;  %v925_v41 = vmax.f32 %v905_v33, 1e-12 }
 0x293   : > { %v907_v34 = vmul.f32 %v1498_v21, %v1825_v6  ;;  %v881_v39 = vsel %vm880_vm12, %v1820_v1, %v879_v26  ;;  %v891_v43 = vsel %vm889_vm6, %v890_v32, %v888_v36  ;;  %v924_v44 = vmax.f32 %v898_v37, 1e-12  ;;  %v1500_v60 = vpop.eup %1499 }
 0x294   : > { %v916_v42 = vsel %vm915_vm14, %v1822_v5, %v914_v31  ;;  %v884_v47 = vsel %vm882_vm13, %v883_v40, %v881_v39  ;;  %v923_v50 = vmax.f32 %v891_v43, 1e-12  ;;  %1503 = vrcp.f32 %v925_v41 }
 0x295   : > { %v909_v45 = vsel %vm908_vm15, %v1825_v6, %v907_v34  ;;  %v919_v49 = vsel %vm917_vm0, %v918_v46, %v916_v42  ;;  %v922_v53 = vmax.f32 %v884_v47, 1e-12  ;;  %1505 = vrcp.f32 %v924_v44 }
 0x296   : > { %v912_v51 = vsel %vm910_vm1, %v911_v48, %v909_v45  ;;  %v927_v55 = vmax.f32 %v919_v49, 1e-12  ;;  %1507 = vrcp.f32 %v923_v50  ;;  %v1502_v63 = vpop.eup %1501 }
 0x297   : > { %v926_v56 = vmax.f32 %v912_v51, 1e-12  ;;  %1509 = vrcp.f32 %v922_v53 }
 0x298   : > { %1511 = vrcp.f32 %v927_v55 }
 0x299   : > { %1513 = vrcp.f32 %v926_v56 }
 0x29e   : > { %v1504_v3 = vpop.eup %1503 }
 0x29f   : > { %v1506_v6 = vpop.eup %1505 }
 0x2a0   : > { %v1508_v14 = vpop.eup %1507 }
 0x2a1   : > { %v1510_v18 = vpop.eup %1509 }
 0x2a2   : > { %v1512_v22 = vpop.eup %1511 }
 0x2a3   : > { %v1514_v26 = vpop.eup %1513 }
 0x2bb   : > { %v1335_v52 = vpop.f32.mrb[8].mxu0 }
 0x2bc   : > { %825 = vst [vmem:[%s1857_s14 + $0x8] sm:$0xff] %v1335_v52  ;;  %v785_v54 = vpop.f32.mrb[9].mxu0  ;;  %v937_v59 = vsub.f32 0.0, %v1335_v52 }
 0x2bd   : > { %824 = vst [vmem:[%s1857_s14] sm:$0xff] %v785_v54  ;;  %v936_v61 = vsub.f32 0.0, %v785_v54 }
 0x2be   : > { %v945_v7 = vmul.f32 %v1500_v60, %v937_v59 }
 0x2bf   : > { %v1338_v57 = vpop.f32.mrb[10].mxu0  ;;  %v944_v9 = vmul.f32 %v1502_v63, %v936_v61 }
 0x2c0   : > { %827 = vst [vmem:[%s1857_s14 + $0x18] sm:$0xff] %v1338_v57  ;;  %v795_v58 = vpop.f32.mrb[11].mxu0  ;;  %v939_v12 = vsub.f32 0.0, %v1338_v57 }
 0x2c1   : > { %826 = vst [vmem:[%s1857_s14 + $0x10] sm:$0xff] %v795_v58  ;;  %v938_v15 = vsub.f32 0.0, %v795_v58 }
 0x2c2   : > { %v947_v27 = vmul.f32 %v1508_v14, %v939_v12 }
 0x2c3   : > { %v1341_v62 = vpop.f32.mrb[12].mxu0  ;;  %v946_v29 = vmul.f32 %v1510_v18, %v938_v15 }
 0x2c4   : > { %829 = vst [vmem:[%s1857_s14 + $0x28] sm:$0xff] %v1341_v62  ;;  %v941_v0 = vsub.f32 0.0, %v1341_v62  ;;  %v967_v1 = vmax.f32 %v1335_v52, %v1341_v62  ;;  %v805_v2 = vpop.f32.mrb[13].mxu0 }
 0x2c5   : > { %828 = vst [vmem:[%s1857_s14 + $0x20] sm:$0xff] %v805_v2  ;;  %v940_v4 = vsub.f32 0.0, %v805_v2  ;;  %v966_v5 = vmax.f32 %v785_v54, %v805_v2 }
 0x2c6   : > { %v949_v8 = vmul.f32 %v1504_v3, %v941_v0 }
 0x2c7   : > { %v948_v10 = vmul.f32 %v1506_v6, %v940_v4  ;;  %v970_v11 = vmax.f32 %v966_v5, %v967_v1 }
 0x2c8   : > { %v953_v13 = vmin.f32 %v945_v7, %v949_v8 }
 0x2c9   : > { %v952_v16 = vmin.f32 %v944_v9, %v948_v10  ;;  %v1344_v17 = vpop.f32.mrb[14].mxu0 }
 0x2ca   : > { %831 = vst [vmem:[%s1857_s14 + $0x38] sm:$0xff] %v1344_v17  ;;  %v943_v19 = vsub.f32 0.0, %v1344_v17  ;;  %v969_v20 = vmax.f32 %v1338_v57, %v1344_v17  ;;  %v815_v21 = vpop.f32.mrb[15].mxu0 }
 0x2cb   : > { %v956_v23 = vmin.f32 %v952_v16, %v953_v13  ;;  %830 = vst [vmem:[%s1857_s14 + $0x30] sm:$0xff] %v815_v21  ;;  %v942_v24 = vsub.f32 0.0, %v815_v21  ;;  %v968_v25 = vmax.f32 %v795_v58, %v815_v21  ;;  %s1521_s14 = scalar_lea.vmem %s1520_s29, 32 }
 0x2cc   : > { %v951_v28 = vmul.f32 %v1512_v22, %v943_v19  ;;  %p1523_p1 = scmp.lt.s32.totalorder %s1521_s14, %s1515_s27 }
 0x2cd   : > { %v950_v30 = vmul.f32 %v1514_v26, %v942_v24  ;;  %v971_v31 = vmax.f32 %v968_v25, %v969_v20 }
 0x2ce   : > { %v955_v32 = vmin.f32 %v947_v27, %v951_v28  ;;  %p1524_p2 = por %p1523_p1, %p1522_p0 }
 0x2cf   : > { %v954_v33 = vmin.f32 %v946_v29, %v950_v30  ;;  %v972_v34 = vmax.f32 %v970_v11, %v971_v31 }
 0x2d0   : > { %p1525_p3 = pnand %p1524_p2, %p1518_p13 }
 0x2d1   : > { %v957_v35 = vmin.f32 %v954_v33, %v955_v32  ;;  %v973_v36 = vrot.slane %v972_v34, 4 }
 0x2d3   : > { %v958_v37 = vmin.f32 %v956_v23, %v957_v35  ;;  %v974_v38 = vmax.f32 %v972_v34, %v973_v36 }
 0x2d5   : > { %v975_v39 = vrot.slane %v974_v38, 2  ;;  %v959_v40 = vrot.slane %v958_v37, 4 }
 0x2d7   : > { %v976_v41 = vmax.f32 %v974_v38, %v975_v39  ;;  %v960_v42 = vmin.f32 %v958_v37, %v959_v40 }
 0x2d9   : > { %v977_v43 = vrot.slane %v976_v41, 1  ;;  %v961_v44 = vrot.slane %v960_v42, 2 }
 0x2db   : > { %v978_v45 = vmax.f32 %v976_v41, %v977_v43  ;;  %v962_v46 = vmin.f32 %v960_v42, %v961_v44 }
 0x2dd   : > { %1378 = vmatmul.mubr.f32.vlgmr.msra.gmra.mrb[8].mxu1 %v978_v45  ;;  %v963_v47 = vrot.slane %v962_v46, 1 }
 0x2df   : > { %v964_v48 = vmin.f32 %v962_v46, %v963_v47 }
 0x2e1   : > { %965 = vst [vmem:[%s336_s24] sm:$0x1] %v964_v48 }
 0x2e2   : > { %1528 = shalt.err (!%p1525_p3)
}
 0x2e3   : > { %s1529_s24 = scalar_lea.hbm %s1880_s22, 16  ;;  %s1533_s28 = scalar_lea.hbm %s1957_s8, 32 }
 0x2e4   : > { %p1530_p4 = scmp.ne.s32.totalorder %s1880_s22, %s1529_s24  ;;  %p1534_p9 = scmp.lt.u32.totalorder %s1880_s22, %s1957_s8 }
 0x2e5   : > { %p1535_p10 = scmp.lt.u32.totalorder %s1533_s28, %s1529_s24  ;;  %p1537_p12 = scmp.lt.u32.totalorder %s1529_s24, %s1880_s22 }
 0x2e6   : > { %p1531_p7 = pnand %p1530_p4, %p1704_p5 }
 0x2e7   : > { %p1536_p11 = por %p1535_p10, %p1534_p9 }
 0x2e8   : > { %p1532_p8 = pneg %p1531_p7 }
 0x2e9   : > { %p1538_p13 = por %p1537_p12, %p1536_p11 }
 0x2eb   : > { %p1539_p0 = pnand %p1538_p13, %p1532_p8 }
 0x2ed   : > { %1542 = shalt.err (!%p1539_p0)
}
 0x2ee   : > { %1404 = dma.vmem_to_hbm [thread:$0]  (%p1704_p5), %s1093_s25, 16, %s1880_s22, %s1072_s26  }
 0x2ef   : > { %s342_s27 = scalar_lea.vmem [#allocation4], %s1871_s23  ;;  %s1962_s16 = sshll.u32 %s1687_s13, 4 }
 0x2f0   : > { %s1105_s14 = sshll.u32 %s342_s27, 4  ;;  %s1908_s24 = scalar_lea.hbm %s1958_s9, %s1962_s16  ;;  %s1901_s14 = int_to_ptr.vmem [resolvable:$true] %s1105_s14 }
 0x2f1   : > { %s1076_s28 = scalar_lea.sflag [#allocation5], %s1871_s23  ;;  %s1543_s29 = scalar_lea.vmem %s1901_s14, 16 }
 0x2f2   : > { %p1544_p1 = scmp.ne.s32.totalorder %s1901_s14, %s1543_s29  ;;  %s1615_s22 = smov [#allocation4]  }
 0x2f3   : > { %s1547_s25 = sshll.u32 %s1615_s22, 4  ;;  %s1548_s25 = int_to_ptr.vmem [resolvable:$false] %s1547_s25 }
 0x2f4   : > { %p1545_p2 = pnand %p1544_p1, %p1704_p5  ;;  %s1549_s13 = scalar_lea.vmem %s1548_s25, 32 }
 0x2f5   : > { %p1550_p4 = scmp.lt.s32.totalorder %s1901_s14, %s1548_s25  ;;  %p1551_p7 = scmp.lt.s32.totalorder %s1549_s13, %s1543_s29 }
 0x2f6   : > { %p1546_p3 = pneg %p1545_p2 }
 0x2f7   : > { %p1552_p8 = por %p1551_p7, %p1550_p4 }
 0x2f9   : > { %p1553_p9 = pnand %p1552_p8, %p1546_p3 }
 0x3b0   : > { %v1061_v49 = vpop.f32.mrb[8].mxu1 }
 0x3b1   : > { %1065 = vst [vmem:[%s342_s27] sm:$0x1] %v1061_v49  ;;  %v1379_v50 = vpop.f32.mrb[9].mxu1 }
 0x3b2   : > { %1556 = shalt.err (!%p1553_p9)
}
 0x3b3   : > { %s1557_s23 = scalar_lea.hbm %s1908_s24, 16  ;;  %s1561_s16 = scalar_lea.hbm %s1958_s9, 32 }
 0x3b4   : > { %p1558_p10 = scmp.ne.s32.totalorder %s1908_s24, %s1557_s23  ;;  %p1562_p13 = scmp.lt.u32.totalorder %s1908_s24, %s1958_s9 }
 0x3b5   : > { %p1563_p0 = scmp.lt.u32.totalorder %s1561_s16, %s1557_s23  ;;  %p1565_p2 = scmp.lt.u32.totalorder %s1557_s23, %s1908_s24 }
 0x3b6   : > { %p1559_p11 = pnand %p1558_p10, %p1704_p5 }
 0x3b7   : > { %p1564_p1 = por %p1563_p0, %p1562_p13 }
 0x3b8   : > { %p1560_p12 = pneg %p1559_p11 }
 0x3b9   : > { %p1566_p3 = por %p1565_p2, %p1564_p1 }
 0x3bb   : > { %p1567_p4 = pnand %p1566_p3, %p1560_p12 }
 0x3bd   : > { %1570 = shalt.err (!%p1567_p4)
}
 0x3be   : > { %1405 = dma.vmem_to_hbm [thread:$0]  (%p1704_p5), %s1901_s14, 16, %s1908_s24, %s1076_s28  }
 0x3bf PF: > { %p1415_p7 = scmp.ge.s32.totalorder %s1609_s12, 2  ;;  %s1125_s29 = sand.u32 1, %s1597_s30  }
 0x3c0   : > { %s1126_s22 = scalar_lea.sflag [#allocation3], %s1125_s29 }
 0x3c1   : > { %p1409_p8 = pnand %p1415_p7, %p1708_p6 }
 0x3c3   : > { %1588 = dma.done.wait (!%p1409_p8), %s1126_s22, 16  }
 0x3c4   : > { %1590 = vsyncadd (!%p1409_p8), %s1126_s22, 4294967280  ;;  %s1134_s25 = scalar_lea.sflag [#allocation5], %s1125_s29 }
 0x3c5   : > { %1592 = dma.done.wait (!%p1409_p8), %s1134_s25, 16  }
 0x3c6   : > { %1594 = vsyncadd (!%p1409_p8), %s1134_s25, 4294967280  ;;  %p23_p5 = scmp.ge.s32.totalorder %s1691_s15, 4   ;;  %s1963_s30 = smov %s1601_s10 }
 0x3c7   : > { %s1964_s10 = smov %s1605_s11  ;;  %s1965_s11 = smov %s1702_s18 }
 0x3c8   : > { %s1966_s12 = smov %s1691_s15  ;;  %25 = sbr.rel (!%p23_p5) target bundleno = 5 (0x5), region = 112 }
 0x3cf   :  { %1138 = vsyncpa [#allocation3], 1 }
 0x3d0   :  { %1140 = vsyncpa [#allocation3 + $0x1], 1 }
 0x3d1   :  { %1141 = vsyncpa [#allocation5], 1 }
 0x3d2   :  { %1143 = vsyncpa [#allocation5 + $0x1], 1 }

</bundles_post_ra>
